<compile_context>
chip_gen: v6e
topology: v6e:2x2x1
jax: 0.10.0
libtpu: 0.0.40
codegen_flags: <defaults>
</compile_context>

<pallas_src>
import jax
import jax.numpy as jnp
from jax.experimental import pallas as pl
from jax.experimental.pallas import tpu as pltpu


def qnet_kernel(x_ref, w1_ref, b1_ref, w2_ref, b2_ref, w3_ref, b3_ref, o_ref):
    x = x_ref[...]            # (TM, 4)  f32
    w1 = w1_ref[...]          # (4, 128) f32

    # fc1 on the VPU: unrolled broadcast-FMA over K=4 (no MXU round-trip).
    h1 = (x[:, 0:1] * w1[0:1, :]
          + x[:, 1:2] * w1[1:2, :]
          + x[:, 2:3] * w1[2:3, :]
          + x[:, 3:4] * w1[3:4, :]
          + b1_ref[...])
    h1 = jnp.maximum(h1, 0.0)                                   # (TM, 128)

    # fc2 on the MXU: (TM,128) @ (128,128), f32 accumulation.
    h2 = jnp.dot(h1, w2_ref[...], preferred_element_type=jnp.float32)
    h2 = jnp.maximum(h2 + b2_ref[...], 0.0)                     # (TM, 128)

    # fc3 on the MXU with lane-padded weights: (TM,128) @ (128,128).
    # Columns >= 2 are zero-padded; full 128-lane store is unmasked.
    out = jnp.dot(h2, w3_ref[...], preferred_element_type=jnp.float32)
    o_ref[...] = (out + b3_ref[...]).astype(o_ref.dtype)        # (TM, 128)


def _round_up(n, m):
    return (n + m - 1) // m * m


def qnet_forward(x, params, *, tm=256):
    """x: (B, 4) float32. params: dict of pre-transposed weights / biases.

    Returns (B, 2) Q-values. Batch is tiled with tile TM (multiple of 8,
    capped at `tm`); batch axis is a "parallel" grid dimension.
    """
    B = x.shape[0]
    w1, b1, w2, b2, w3, b3 = (
        params["w1"], params["b1"], params["w2"],
        params["b2"], params["w3"], params["b3"],
    )

    # Lane-pad the 2-wide output layer to 128 lanes (zero columns 2..127).
    out_pad = 128
    w3p = jnp.zeros((w3.shape[0], out_pad), jnp.float32).at[:, :w3.shape[1]].set(w3)
    b3p = jnp.zeros((1, out_pad), jnp.float32).at[:, :b3.shape[1]].set(b3)

    # Batch tiling: TM multiple of 8, at most `tm`; pad B up to a multiple.
    TM = min(tm, _round_up(B, 8))
    Bp = _round_up(B, TM)
    if Bp != B:
        x = jnp.concatenate([x, jnp.zeros((Bp - B, x.shape[1]), x.dtype)], axis=0)
    grid = (Bp // TM,)

    def resident(arr):
        # Full-array block, constant index_map -> stays in VMEM across tiles.
        return pl.BlockSpec(arr.shape, lambda i: tuple(0 for _ in arr.shape))

    out_padded = pl.pallas_call(
        qnet_kernel,
        out_shape=jax.ShapeDtypeStruct((Bp, out_pad), jnp.float32),
        grid=grid,
        in_specs=[
            pl.BlockSpec((TM, 4), lambda i: (i, 0)),   # x: advances with batch tile
            resident(w1), resident(b1),
            resident(w2), resident(b2),
            resident(w3p), resident(b3p),
        ],
        out_specs=pl.BlockSpec((TM, out_pad), lambda i: (i, 0)),
        compiler_params=pltpu.CompilerParams(
            dimension_semantics=("parallel",)),        # 2-TC sharding on v7x
    )(x, w1, b1, w2, b2, w3p, b3p)

    return out_padded[:B, :2]


def init_params(key):
    """Deterministic init mimicking torch.nn.Linear default
    (U[-1/sqrt(fan_in), 1/sqrt(fan_in)]). Weights stored pre-transposed (in, out)."""
    dims = [(4, 128), (128, 128), (128, 2)]
    params = {}
    for i, (fan_in, fan_out) in enumerate(dims, start=1):
        key, kw, kb = jax.random.split(key, 3)
        bound = 1.0 / jnp.sqrt(jnp.float32(fan_in))
        params[f"w{i}"] = jax.random.uniform(
            kw, (fan_in, fan_out), jnp.float32, -bound, bound)
        params[f"b{i}"] = jax.random.uniform(
            kb, (1, fan_out), jnp.float32, -bound, bound)
    return params


def _reference(x, params):
    h = jnp.maximum(x @ params["w1"] + params["b1"], 0.0)
    h = jnp.maximum(h @ params["w2"] + params["b2"], 0.0)
    return h @ params["w3"] + params["b3"]


if __name__ == "__main__":
    key = jax.random.PRNGKey(0)
    key, kx, kx2 = jax.random.split(key, 3)
    params = init_params(key)

    # Small case (single CartPole-style observation batch).
    B = 2
    x = jax.random.normal(kx, (B, 4), jnp.float32)
    out = jax.block_until_ready(qnet_forward(x, params))
    assert out.shape == (B, 2)
    assert jnp.allclose(out, _reference(x, params), atol=1e-5, rtol=1e-5)

    # Larger, non-multiple batch to exercise the tiled / padded grid path.
    B2 = 300
    x2 = jax.random.normal(kx2, (B2, 4), jnp.float32)
    out2 = jax.block_until_ready(qnet_forward(x2, params))
    assert out2.shape == (B2, 2)
    assert jnp.allclose(out2, _reference(x2, params), atol=1e-5, rtol=1e-5)

    print("KERNEL_OK")
</pallas_src>

<mosaic_0001>
module attributes {stable_mosaic.version = 11 : i64} {
  func.func @qnet_kernel(%arg0: i32, %arg1: memref<8x4xf32, #tpu.memory_space<vmem>>, %arg2: memref<4x128xf32, #tpu.memory_space<vmem>>, %arg3: memref<1x128xf32, #tpu.memory_space<vmem>>, %arg4: memref<128x128xf32, #tpu.memory_space<vmem>>, %arg5: memref<1x128xf32, #tpu.memory_space<vmem>>, %arg6: memref<128x128xf32, #tpu.memory_space<vmem>>, %arg7: memref<1x128xf32, #tpu.memory_space<vmem>>, %arg8: memref<8x128xf32, #tpu.memory_space<vmem>>) attributes {dimension_semantics = [#tpu.dimension_semantics<parallel>], iteration_bounds = array<i64: 1>, scalar_prefetch = 0 : i64, scratch_operands = 0 : i64, tpu.core_type = #tpu.core_type<tc>, window_params = [{transform_indices = @transform_0, window_bounds = array<i64: 8, 4>}, {pipeline_mode = #tpu.pipeline_mode<synchronous>, transform_indices = @transform_1, window_bounds = array<i64: 4, 128>}, {pipeline_mode = #tpu.pipeline_mode<synchronous>, transform_indices = @transform_2, window_bounds = array<i64: 1, 128>}, {pipeline_mode = #tpu.pipeline_mode<synchronous>, transform_indices = @transform_3, window_bounds = array<i64: 128, 128>}, {pipeline_mode = #tpu.pipeline_mode<synchronous>, transform_indices = @transform_4, window_bounds = array<i64: 1, 128>}, {pipeline_mode = #tpu.pipeline_mode<synchronous>, transform_indices = @transform_5, window_bounds = array<i64: 128, 128>}, {pipeline_mode = #tpu.pipeline_mode<synchronous>, transform_indices = @transform_6, window_bounds = array<i64: 1, 128>}, {transform_indices = @transform_7, window_bounds = array<i64: 8, 128>}]} {
    %c0 = arith.constant 0 : index
    %c0_0 = arith.constant 0 : index
    %0 = vector.load %arg1[%c0, %c0_0] : memref<8x4xf32, #tpu.memory_space<vmem>>, vector<8x4xf32>
    %c0_1 = arith.constant 0 : index
    %c0_2 = arith.constant 0 : index
    %1 = vector.load %arg2[%c0_1, %c0_2] : memref<4x128xf32, #tpu.memory_space<vmem>>, vector<4x128xf32>
    %2 = vector.extract_strided_slice %0 {offsets = [0, 0], sizes = [8, 1], strides = [1, 1]} : vector<8x4xf32> to vector<8x1xf32>
    %3 = vector.extract_strided_slice %1 {offsets = [0, 0], sizes = [1, 128], strides = [1, 1]} : vector<4x128xf32> to vector<1x128xf32>
    %4 = vector.broadcast %2 : vector<8x1xf32> to vector<8x128xf32>
    %5 = vector.broadcast %3 : vector<1x128xf32> to vector<8x128xf32>
    %6 = arith.mulf %4, %5 : vector<8x128xf32>
    %7 = vector.extract_strided_slice %0 {offsets = [0, 1], sizes = [8, 1], strides = [1, 1]} : vector<8x4xf32> to vector<8x1xf32>
    %8 = vector.extract_strided_slice %1 {offsets = [1, 0], sizes = [1, 128], strides = [1, 1]} : vector<4x128xf32> to vector<1x128xf32>
    %9 = vector.broadcast %7 : vector<8x1xf32> to vector<8x128xf32>
    %10 = vector.broadcast %8 : vector<1x128xf32> to vector<8x128xf32>
    %11 = arith.mulf %9, %10 : vector<8x128xf32>
    %12 = arith.addf %6, %11 : vector<8x128xf32>
    %13 = vector.extract_strided_slice %0 {offsets = [0, 2], sizes = [8, 1], strides = [1, 1]} : vector<8x4xf32> to vector<8x1xf32>
    %14 = vector.extract_strided_slice %1 {offsets = [2, 0], sizes = [1, 128], strides = [1, 1]} : vector<4x128xf32> to vector<1x128xf32>
    %15 = vector.broadcast %13 : vector<8x1xf32> to vector<8x128xf32>
    %16 = vector.broadcast %14 : vector<1x128xf32> to vector<8x128xf32>
    %17 = arith.mulf %15, %16 : vector<8x128xf32>
    %18 = arith.addf %12, %17 : vector<8x128xf32>
    %19 = vector.extract_strided_slice %0 {offsets = [0, 3], sizes = [8, 1], strides = [1, 1]} : vector<8x4xf32> to vector<8x1xf32>
    %20 = vector.extract_strided_slice %1 {offsets = [3, 0], sizes = [1, 128], strides = [1, 1]} : vector<4x128xf32> to vector<1x128xf32>
    %21 = vector.broadcast %19 : vector<8x1xf32> to vector<8x128xf32>
    %22 = vector.broadcast %20 : vector<1x128xf32> to vector<8x128xf32>
    %23 = arith.mulf %21, %22 : vector<8x128xf32>
    %24 = arith.addf %18, %23 : vector<8x128xf32>
    %c0_3 = arith.constant 0 : index
    %c0_4 = arith.constant 0 : index
    %25 = vector.load %arg3[%c0_3, %c0_4] : memref<1x128xf32, #tpu.memory_space<vmem>>, vector<1x128xf32>
    %26 = vector.broadcast %25 : vector<1x128xf32> to vector<8x128xf32>
    %27 = arith.addf %24, %26 : vector<8x128xf32>
    %cst = arith.constant 0.000000e+00 : f32
    %28 = vector.broadcast %cst : f32 to vector<8x128xf32>
    %29 = arith.maximumf %27, %28 : vector<8x128xf32>
    %c0_5 = arith.constant 0 : index
    %c0_6 = arith.constant 0 : index
    %30 = vector.load %arg4[%c0_5, %c0_6] : memref<128x128xf32, #tpu.memory_space<vmem>>, vector<128x128xf32>
    %cst_7 = arith.constant dense<0.000000e+00> : vector<8x128xf32>
    %31 = tpu.matmul %29, %30, %cst_7 {dimension_numbers = #tpu.dot_dimension_numbers<[1], [0], [0], [1], [0, 0, 1, 1], [], []>} : vector<8x128xf32>, vector<128x128xf32>, vector<8x128xf32> -> vector<8x128xf32>
    %c0_8 = arith.constant 0 : index
    %c0_9 = arith.constant 0 : index
    %32 = vector.load %arg5[%c0_8, %c0_9] : memref<1x128xf32, #tpu.memory_space<vmem>>, vector<1x128xf32>
    %33 = vector.broadcast %32 : vector<1x128xf32> to vector<8x128xf32>
    %34 = arith.addf %31, %33 : vector<8x128xf32>
    %cst_10 = arith.constant 0.000000e+00 : f32
    %35 = vector.broadcast %cst_10 : f32 to vector<8x128xf32>
    %36 = arith.maximumf %34, %35 : vector<8x128xf32>
    %c0_11 = arith.constant 0 : index
    %c0_12 = arith.constant 0 : index
    %37 = vector.load %arg6[%c0_11, %c0_12] : memref<128x128xf32, #tpu.memory_space<vmem>>, vector<128x128xf32>
    %cst_13 = arith.constant dense<0.000000e+00> : vector<8x128xf32>
    %38 = tpu.matmul %36, %37, %cst_13 {dimension_numbers = #tpu.dot_dimension_numbers<[1], [0], [0], [1], [0, 0, 1, 1], [], []>} : vector<8x128xf32>, vector<128x128xf32>, vector<8x128xf32> -> vector<8x128xf32>
    %c0_14 = arith.constant 0 : index
    %c0_15 = arith.constant 0 : index
    %39 = vector.load %arg7[%c0_14, %c0_15] : memref<1x128xf32, #tpu.memory_space<vmem>>, vector<1x128xf32>
    %40 = vector.broadcast %39 : vector<1x128xf32> to vector<8x128xf32>
    %41 = arith.addf %38, %40 : vector<8x128xf32>
    %c0_16 = arith.constant 0 : index
    %c0_17 = arith.constant 0 : index
    %42 = vector.load %arg8[%c0_16, %c0_17] : memref<8x128xf32, #tpu.memory_space<vmem>>, vector<8x128xf32>
    tpu.vector_store %arg8[%c0_16, %c0_17], %41 {strides = array<i32>} : memref<8x128xf32, #tpu.memory_space<vmem>>, vector<8x128xf32>,
    return
  }
  func.func @transform_0(%arg0: i32) -> (i32, i32) {
    %c0_i32 = arith.constant 0 : i32
    %c0_i32_0 = arith.constant 0 : i32
    return %arg0, %c0_i32 : i32, i32
  }
  func.func @transform_1(%arg0: i32) -> (i32, i32) {
    %c0_i32 = arith.constant 0 : i32
    %c0_i32_0 = arith.constant 0 : i32
    %c0_i32_1 = arith.constant 0 : i32
    return %c0_i32, %c0_i32_0 : i32, i32
  }
  func.func @transform_2(%arg0: i32) -> (i32, i32) {
    %c0_i32 = arith.constant 0 : i32
    %c0_i32_0 = arith.constant 0 : i32
    %c0_i32_1 = arith.constant 0 : i32
    return %c0_i32, %c0_i32_0 : i32, i32
  }
  func.func @transform_3(%arg0: i32) -> (i32, i32) {
    %c0_i32 = arith.constant 0 : i32
    %c0_i32_0 = arith.constant 0 : i32
    %c0_i32_1 = arith.constant 0 : i32
    return %c0_i32, %c0_i32_0 : i32, i32
  }
  func.func @transform_4(%arg0: i32) -> (i32, i32) {
    %c0_i32 = arith.constant 0 : i32
    %c0_i32_0 = arith.constant 0 : i32
    %c0_i32_1 = arith.constant 0 : i32
    return %c0_i32, %c0_i32_0 : i32, i32
  }
  func.func @transform_5(%arg0: i32) -> (i32, i32) {
    %c0_i32 = arith.constant 0 : i32
    %c0_i32_0 = arith.constant 0 : i32
    %c0_i32_1 = arith.constant 0 : i32
    return %c0_i32, %c0_i32_0 : i32, i32
  }
  func.func @transform_6(%arg0: i32) -> (i32, i32) {
    %c0_i32 = arith.constant 0 : i32
    %c0_i32_0 = arith.constant 0 : i32
    %c0_i32_1 = arith.constant 0 : i32
    return %c0_i32, %c0_i32_0 : i32, i32
  }
  func.func @transform_7(%arg0: i32) -> (i32, i32) {
    %c0_i32 = arith.constant 0 : i32
    %c0_i32_0 = arith.constant 0 : i32
    return %arg0, %c0_i32 : i32, i32
  }
}

</mosaic_0001>

<bundles_post_ra>
// kernel: tpu_custom_call.1
= control target key start
LH: loop header
LB: loop body
LE: loop exit
PB: predicated region body
PF: predicated region fallthrough
CT: control target
= control target key end

     0   :  { %12 = vsyncpa [#allocation3], 0  ;;  %s608_s0 = inlined_call_operand.vmem [shape: f32[8,4], index: 0, kind: input, shape index: {}]   ;;  %s609_s1 = inlined_call_operand.vmem [shape: f32[4,128], index: 1, kind: input, shape index: {}]   ;;  %s610_s2 = inlined_call_operand.vmem [shape: f32[1,128], index: 2, kind: input, shape index: {}]   ;;  %s611_s3 = inlined_call_operand.hbm [shape: f32[128,128], index: 3, kind: input, shape index: {}]   ;;  %s612_s4 = inlined_call_operand.vmem [shape: f32[1,128], index: 4, kind: input, shape index: {}]   ;;  %s613_s5 = inlined_call_operand.hbm [shape: f32[128,128], index: 5, kind: input, shape index: {}]   ;;  %s614_s6 = inlined_call_operand.vmem [shape: f32[1,128], index: 6, kind: input, shape index: {}]   ;;  %s615_s7 = inlined_call_operand.hbm [shape: f32[8,128], index: 7, kind: output, shape index: {}]  }
   0x1   :  { %13 = vsyncpa [#allocation6], 0 }
   0x2   :  { %14 = vsyncpa [#allocation4], 0  ;;  %s499_s24 = smov [#allocation2]  }
   0x3   :  { %s26_s25 = sshll.u32 %s499_s24, 4  ;;  %s27_s25 = int_to_ptr.vmem [resolvable:$true] %s26_s25 }
   0x4   :  { %s441_s26 = scalar_lea.vmem %s27_s25, 2048  ;;  %p446_p1 = scmp.lt.s32.totalorder %s27_s25, %s27_s25 }
   0x5   :  { %p442_p0 = scmp.ne.s32.totalorder %s27_s25, %s441_s26  ;;  %p447_p2 = scmp.lt.s32.totalorder %s441_s26, %s441_s26 }
   0x7   :  { %p448_p3 = por %p447_p2, %p446_p1 }
   0x9   :  { %p449_p4 = pnand %p448_p3, %p442_p0 }
   0xb   :  { %452 = shalt.err (!%p449_p4)
}
   0xc   :  { %s500_s27 = smov 128   ;;  %s501_s28 = smov 8  }
   0xd   :  { %32 = dma.hbm_to_vmem [thread:$0]  %s611_s3, 2048, %s27_s25, [#allocation3], %s500_s27, %s500_s27, %s501_s28  }
   0xe   :  { %s502_s8 = smov [#allocation5]  }
   0xf   :  { %s40_s9 = sshll.u32 %s502_s8, 4  ;;  %s41_s9 = int_to_ptr.vmem [resolvable:$true] %s40_s9 }
  0x10   :  { %s461_s10 = scalar_lea.vmem %s41_s9, 2048  ;;  %p466_p6 = scmp.lt.s32.totalorder %s41_s9, %s41_s9 }
  0x11   :  { %p462_p5 = scmp.ne.s32.totalorder %s41_s9, %s461_s10  ;;  %p467_p7 = scmp.lt.s32.totalorder %s461_s10, %s461_s10 }
  0x13   :  { %p468_p8 = por %p467_p7, %p466_p6 }
  0x15   :  { %p469_p9 = pnand %p468_p8, %p462_p5 }
  0x17   :  { %472 = shalt.err (!%p469_p9)
}
  0x18   :  { %46 = dma.hbm_to_vmem [thread:$0]  %s613_s5, 2048, %s41_s9, [#allocation6], %s500_s27, %s500_s27, %s501_s28  }
  0x19   :  { %493 = dma.done.wait [#allocation3], 2048  }
  0x1a   :  { %494 = vsyncadd [#allocation3], 4294965248 }
  0x1b   :  { %495 = dma.done.wait [#allocation6], 2048  }
  0x1c   :  { %496 = vsyncadd [#allocation6], 4294965248  ;;  %v503_v0 = vmov 0   ;;  %v504_v1 = vmov 2   ;;  %v505_v2 = vmov 0.0   ;;  %v55_v3 = vld [vmem:[%s608_s0] sm:$0xff]  ;;  %v62_v35 = vlaneseq }
  0x1d   :  { %428 = vset.pattern.permute.xlu0 %v503_v0  ;;  %430 = vset.pattern.permute.xlu1 %v504_v1  ;;  %v121_v4 = vld [vmem:[#allocation2 + $0x78] sm:$0xff]  ;;  %v120_v5 = vld [vmem:[#allocation2 + $0x70] sm:$0xff]  ;;  %v506_v6 = vmov 1   ;;  %v507_v7 = vmov 3   ;;  %v119_v8 = vld [vmem:[#allocation2 + $0x68] sm:$0xff]  ;;  %vm508_vm0 = vmmov 0  }
  0x1e   :  { %347 = vmatprep.subr.mxu0 %v505_v2  ;;  %382 = vmatprep.subr.mxu1 %v505_v2  ;;  %v118_v9 = vld [vmem:[#allocation2 + $0x60] sm:$0xff]  ;;  %v117_v10 = vld [vmem:[#allocation2 + $0x58] sm:$0xff]  ;;  %v116_v11 = vld [vmem:[#allocation2 + $0x50] sm:$0xff]  ;;  %v63_v36 = vshrl.u32 %v62_v35, 7  ;;  %s509_s18 = smov [#allocation7]  }
  0x1f   :  { %59 = vperm.xlu0 %428, %v55_v3   ;;  %78 = vperm.xlu1 %430, %v55_v3   ;;  %v115_v12 = vld [vmem:[#allocation2 + $0x48] sm:$0xff]  ;;  %v215_v13 = vld [vmem:[#allocation5 + $0x78] sm:$0xff]  ;;  %v214_v14 = vld [vmem:[#allocation5 + $0x70] sm:$0xff]  ;;  %s300_s19 = sshll.u32 %s509_s18, 4  ;;  %s301_s19 = int_to_ptr.vmem [resolvable:$true] %s300_s19 }
  0x20   :  { %348 = vmatpush3.msra.mxu0 %v121_v4  ;;  %379 = vmatprep.mubr.msk.f32.mxu0 %vm508_vm0, %v505_v2  ;;  %v114_v15 = vld [vmem:[#allocation2 + $0x40] sm:$0xff]  ;;  %v213_v16 = vld [vmem:[#allocation5 + $0x68] sm:$0xff]  ;;  %v113_v17 = vld [vmem:[#allocation2 + $0x38] sm:$0xff]  ;;  %v64_v37 = vsub.s32 0, %v63_v36  ;;  %v73_v38 = vsub.s32 1, %v63_v36  ;;  %v83_v41 = vsub.s32 2, %v63_v36  ;;  %p478_p11 = scmp.lt.s32.totalorder %s301_s19, %s301_s19 }
  0x21   :  { %349 = vmatprep.subr.mxu0 %v505_v2  ;;  %414 = vmatprep.mubr.msk.f32.mxu1 %vm508_vm0, %v505_v2  ;;  %v212_v18 = vld [vmem:[#allocation5 + $0x60] sm:$0xff]  ;;  %v112_v19 = vld [vmem:[#allocation2 + $0x30] sm:$0xff]  ;;  %v211_v20 = vld [vmem:[#allocation5 + $0x58] sm:$0xff]  ;;  %v93_v43 = vsub.s32 3, %v63_v36  ;;  %s473_s20 = scalar_lea.vmem %s301_s19, 128 }
  0x22   :  { %350 = vmatpush3.msra.mxu0 %v120_v5  ;;  %383 = vmatpush3.msra.mxu1 %v215_v13  ;;  %v111_v21 = vld [vmem:[#allocation2 + $0x28] sm:$0xff]  ;;  %v210_v22 = vld [vmem:[#allocation5 + $0x50] sm:$0xff]  ;;  %v110_v23 = vld [vmem:[#allocation2 + $0x20] sm:$0xff]  ;;  %p474_p10 = scmp.ne.s32.totalorder %s301_s19, %s473_s20  ;;  %p479_p12 = scmp.lt.s32.totalorder %s473_s20, %s473_s20 }
  0x23   :  { %429 = vset.pattern.permute.xlu0 %v506_v6  ;;  %431 = vset.pattern.permute.xlu1 %v507_v7  ;;  %v209_v24 = vld [vmem:[#allocation5 + $0x48] sm:$0xff]  ;;  %v109_v25 = vld [vmem:[#allocation2 + $0x18] sm:$0xff]  ;;  %v208_v26 = vld [vmem:[#allocation5 + $0x40] sm:$0xff] }
  0x24   :  { %68 = vperm.xlu0 %429, %v55_v3   ;;  %88 = vperm.xlu1 %431, %v55_v3   ;;  %v108_v27 = vld [vmem:[#allocation2 + $0x10] sm:$0xff]  ;;  %v207_v28 = vld [vmem:[#allocation5 + $0x38] sm:$0xff]  ;;  %v107_v29 = vld [vmem:[#allocation2 + $0x8] sm:$0xff]  ;;  %p480_p13 = por %p479_p12, %p478_p11 }
  0x25   :  { %351 = vmatprep.subr.mxu0 %v505_v2  ;;  %384 = vmatprep.subr.mxu1 %v505_v2  ;;  %v206_v30 = vld [vmem:[#allocation5 + $0x30] sm:$0xff]  ;;  %v106_v31 = vld [vmem:[#allocation2] sm:$0xff]  ;;  %v205_v32 = vld [vmem:[#allocation5 + $0x28] sm:$0xff] }
  0x26   :  { %352 = vmatpush3.msra.mxu0 %v119_v8  ;;  %385 = vmatpush3.msra.mxu1 %v214_v14  ;;  %v204_v33 = vld [vmem:[#allocation5 + $0x20] sm:$0xff]  ;;  %v203_v34 = vld [vmem:[#allocation5 + $0x18] sm:$0xff]  ;;  %v202_v60 = vld [vmem:[#allocation5 + $0x10] sm:$0xff]  ;;  %p481_p0 = pnand %p480_p13, %p474_p10 }
  0x27   :  { %353 = vmatprep.subr.mxu0 %v505_v2  ;;  %386 = vmatprep.subr.mxu1 %v505_v2  ;;  %v56_v39 = vld [vmem:[%s609_s1] sm:$0xf]  ;;  %v201_v61 = vld [vmem:[#allocation5 + $0x8] sm:$0xff] }
  0x28   :  { %354 = vmatpush3.msra.mxu0 %v118_v9  ;;  %432 = vset.pattern.permute.xlu0 %v507_v7  ;;  %v65_v44 = vrot.slane %v56_v39, %v64_v37  ;;  %v74_v45 = vrot.slane %v56_v39, %v73_v38  ;;  %v84_v46 = vrot.slane %v56_v39, %v83_v41  ;;  %v310_v56 = vld [vmem:[%s610_s2] ss:$0 sm:$0xff] }
  0x29   :  { %355 = vmatprep.subr.mxu0 %v505_v2  ;;  %387 = vmatpush3.msra.mxu1 %v213_v16  ;;  %v94_v47 = vrot.slane %v56_v39, %v93_v43  ;;  %v200_v62 = vld [vmem:[#allocation5] sm:$0xff] }
  0x2a   :  { %356 = vmatpush3.msra.mxu0 %v117_v10  ;;  %388 = vmatprep.subr.mxu1 %v505_v2  ;;  %v311_v63 = vld [vmem:[%s612_s4] ss:$0 sm:$0xff] }
  0x2b   :  { %357 = vmatprep.subr.mxu0 %v505_v2  ;;  %389 = vmatpush3.msra.mxu1 %v212_v18  ;;  %v312_v5 = vld [vmem:[%s614_s6] ss:$0 sm:$0xff] }
  0x2c   :  { %358 = vmatpush3.msra.mxu0 %v116_v11  ;;  %390 = vmatprep.subr.mxu1 %v505_v2 }
  0x2d   :  { %359 = vmatprep.subr.mxu0 %v505_v2  ;;  %391 = vmatpush3.msra.mxu1 %v211_v20 }
  0x2e   :  { %360 = vmatpush3.msra.mxu0 %v115_v12  ;;  %392 = vmatprep.subr.mxu1 %v505_v2 }
  0x2f   :  { %361 = vmatprep.subr.mxu0 %v505_v2  ;;  %393 = vmatpush3.msra.mxu1 %v210_v22 }
  0x30   :  { %362 = vmatpush3.msra.mxu0 %v114_v15  ;;  %394 = vmatprep.subr.mxu1 %v505_v2 }
  0x31   :  { %363 = vmatprep.subr.mxu0 %v505_v2  ;;  %395 = vmatpush3.msra.mxu1 %v209_v24 }
  0x32   :  { %364 = vmatpush3.msra.mxu0 %v113_v17  ;;  %396 = vmatprep.subr.mxu1 %v505_v2 }
  0x33   :  { %365 = vmatprep.subr.mxu0 %v505_v2  ;;  %397 = vmatpush3.msra.mxu1 %v208_v26 }
  0x34   :  { %366 = vmatpush3.msra.mxu0 %v112_v19  ;;  %398 = vmatprep.subr.mxu1 %v505_v2 }
  0x35   :  { %367 = vmatprep.subr.mxu0 %v505_v2  ;;  %399 = vmatpush3.msra.mxu1 %v207_v28 }
  0x36   :  { %368 = vmatpush3.msra.mxu0 %v111_v21  ;;  %400 = vmatprep.subr.mxu1 %v505_v2 }
  0x37   :  { %369 = vmatprep.subr.mxu0 %v505_v2  ;;  %401 = vmatpush3.msra.mxu1 %v206_v30 }
  0x38   :  { %370 = vmatpush3.msra.mxu0 %v110_v23  ;;  %402 = vmatprep.subr.mxu1 %v505_v2 }
  0x39   :  { %371 = vmatprep.subr.mxu0 %v505_v2  ;;  %403 = vmatpush3.msra.mxu1 %v205_v32 }
  0x3a   :  { %372 = vmatpush3.msra.mxu0 %v109_v25  ;;  %404 = vmatprep.subr.mxu1 %v505_v2 }
  0x3b   :  { %373 = vmatprep.subr.mxu0 %v505_v2  ;;  %405 = vmatpush3.msra.mxu1 %v204_v33 }
  0x3c   :  { %374 = vmatpush3.msra.mxu0 %v108_v27  ;;  %406 = vmatprep.subr.mxu1 %v505_v2 }
  0x3d   :  { %375 = vmatprep.subr.mxu0 %v505_v2  ;;  %407 = vmatpush3.msra.mxu1 %v203_v34 }
  0x3e   :  { %376 = vmatpush3.msra.mxu0 %v107_v29  ;;  %408 = vmatprep.subr.mxu1 %v505_v2 }
  0x3f   :  { %377 = vmatprep.subr.mxu0 %v505_v2  ;;  %409 = vmatpush3.msra.mxu1 %v202_v60 }
  0x40   :  { %378 = vmatpush3.msra.mxu0 %v106_v31  ;;  %410 = vmatprep.subr.mxu1 %v505_v2 }
  0x41   :  { %411 = vmatpush3.msra.mxu1 %v201_v61 }
  0x42   :  { %412 = vmatprep.subr.mxu1 %v505_v2 }
  0x43   :  { %413 = vmatpush3.msra.mxu1 %v200_v62 }
  0x9a   :  { %v60_v40 = vpop.permute.xlu0 %59  ;;  %v79_v42 = vpop.permute.xlu1 %78 }
  0x9b   :  { %v66_v50 = vmul.f32 %v65_v44, %v60_v40  ;;  %v85_v52 = vmul.f32 %v84_v46, %v79_v42 }
  0x9f   :  { %v69_v48 = vpop.permute.xlu0 %68  ;;  %v89_v49 = vpop.permute.xlu1 %88 }
  0xa0   :  { %v75_v51 = vmul.f32 %v74_v45, %v69_v48  ;;  %v95_v54 = vmul.f32 %v94_v47, %v89_v49 }
  0xa2   :  { %v76_v53 = vadd.f32 %v75_v51, %v66_v50 }
  0xa4   :  { %v86_v55 = vadd.f32 %v85_v52, %v76_v53 }
  0xa6   :  { %v96_v57 = vadd.f32 %v95_v54, %v86_v55 }
  0xa8   :  { %v104_v58 = vadd.f32 %v310_v56, %v96_v57 }
  0xaa   :  { %v105_v59 = vmax.f32 %v104_v58, 0.0 }
  0xac   :  { %380 = vmatmul.mubr.f32.vlgmr.msra.gmra.mxu0 %v105_v59 }
 0x16c   :  { %v195_v0 = vpop.f32.mrf.mxu0 }
 0x16d   :  { %v196_v1 = vadd.f32 %v311_v63, %v195_v0 }
 0x16e   :  { %v381_v3 = vpop.f32.mrf.mxu0 }
 0x16f   :  { %v199_v4 = vmax.f32 %v196_v1, 0.0 }
 0x171   :  { %415 = vmatmul.mubr.f32.vlgmr.msra.gmra.mxu1 %v199_v4 }
 0x231   :  { %v289_v6 = vpop.f32.mrf.mxu1 }
 0x232   :  { %v290_v7 = vadd.f32 %v312_v5, %v289_v6 }
 0x233   :  { %v416_v2 = vpop.f32.mrf.mxu1 }
 0x234   :  { %293 = vst [vmem:[#allocation7] sm:$0xff] %v290_v7 }
 0x235   :  { %484 = shalt.err (!%p481_p0)
}
 0x236   :  { %303 = dma.vmem_to_hbm [thread:$0]  %s301_s19, 128, %s615_s7, [#allocation4]  }
 0x237   :  { %497 = dma.done.wait [#allocation4], 128  }
 0x238   :  { %498 = vsyncadd [#allocation4], 4294967168 }
 0x239   :  { %307 = vsyncpa [#allocation3], 1 }
 0x23a   :  { %308 = vsyncpa [#allocation6], 1 }
 0x23b   :  { %309 = vsyncpa [#allocation4], 1 }

</bundles_post_ra>
